<compile_context>
chip_gen: v7x
topology: tpu7x:2x2x1
jax: 0.10.0
libtpu: 0.0.40
codegen_flags: <defaults>
</compile_context>

<pallas_src>
import functools

import jax
import jax.numpy as jnp
import numpy as np
from jax.experimental import pallas as pl
from jax.experimental.pallas import tpu as pltpu


def _conv3x3_kernel(x_ref, w_ref, b_ref, m_ref, o_ref, patches_ref, *, TH, W, Cin_p):
    """One (batch, row-tile) step: (Cin_p, (TH+2)*W) window -> (Cout, TH*W)."""
    Lo = TH * W                # flat output columns of this row tile
    Lw = (TH + 2) * W          # flat input window (1-row halo top + bottom)
    r = pl.program_id(1)

    start = r * Lo             # window start inside the flat, H-padded image
    if Lo % 128 == 0:
        start = pl.multiple_of(start, 128)

    # Input window (vertical halo already zero-padded by the wrapper).
    win = x_ref[0, :, pl.ds(start, Lw)]                      # (Cin_p, Lw)
    # Horizontal-halo source masking: 2 multiplies total (each shared by 3 taps).
    win_r = win * m_ref[pl.ds(0, 1), :]    # col W-1 of every row zeroed (kw==0 taps)
    win_l = win * m_ref[pl.ds(1, 1), :]    # col 0   of every row zeroed (kw==2 taps)

    zcol = jnp.zeros((Cin_p, 1), dtype=win.dtype)

    # Tap row-group index t = 3*kh + kw; flat shift of tap = kh*W + (kw-1).

    # kw == 1 taps: pure vertical shifts, full-length aligned copies.
    for kh in range(3):
        t = 3 * kh + 1
        patches_ref[pl.ds(t * Cin_p, Cin_p), :] = win[:, kh * W: kh * W + Lo]

    # kw == 0 taps (read col-1): source = win_r, shift = kh*W - 1.
    # kh == 0 starts one element before the window -> shift the destination by 1.
    patches_ref[pl.ds(0, Cin_p), pl.ds(0, 1)] = zcol                 # fixed zero margin
    patches_ref[pl.ds(0, Cin_p), pl.ds(1, Lo - 1)] = win_r[:, : Lo - 1]
    for kh in (1, 2):
        t = 3 * kh
        d = kh * W - 1
        patches_ref[pl.ds(t * Cin_p, Cin_p), :] = win_r[:, d: d + Lo]

    # kw == 2 taps (read col+1): source = win_l, shift = kh*W + 1.
    for kh in (0, 1):
        t = 3 * kh + 2
        d = kh * W + 1
        patches_ref[pl.ds(t * Cin_p, Cin_p), :] = win_l[:, d: d + Lo]
    # kh == 2 runs one element past the window -> last column is a zero margin.
    patches_ref[pl.ds(8 * Cin_p, Cin_p), pl.ds(0, Lo - 1)] = win_l[:, 2 * W + 1:]
    patches_ref[pl.ds(8 * Cin_p, Cin_p), pl.ds(Lo - 1, 1)] = zcol    # fixed zero margin

    # Single fat-K MXU matmul (bf16 in, f32 accumulate), bias, cast, store.
    acc = jnp.dot(w_ref[...], patches_ref[...], preferred_element_type=jnp.float32)
    o_ref[0] = (acc + b_ref[...]).astype(o_ref.dtype)


def _choose_row_tile(H, W, *, lane_target=2048, lane_cap=None):
    """Row-tile height TH | H with TH*W lane-aligned (128) when possible.

    Prefers the smallest tile reaching `lane_target` flat columns (amortizes
    grid overhead and MXU fill/drain), optionally capped by a VMEM budget.
    Falls back to the full image (full-dim block, always BlockSpec-legal)."""
    cands = [d for d in range(1, H) if H % d == 0 and (d * W) % 128 == 0]
    if not cands:
        return H
    if lane_cap is not None:
        capped = [d for d in cands if d * W <= lane_cap]
        cands = capped or cands[:1]
    for d in cands:
        if d * W >= lane_target:
            return d
    return cands[-1]


def weighted_conv(x_nchw, weight_oihw, bias, scale, *, compute_dtype=jnp.bfloat16):
    """x: (N, Cin, H, W); weight: (Cout, Cin, 3, 3); bias: (Cout,) -> (N, Cout, H, W)."""
    N, Cin, H, W = x_nchw.shape
    Cout = weight_oihw.shape[0]
    out_dtype = x_nchw.dtype
    comp = jnp.dtype(compute_dtype)
    isz = comp.itemsize

    # Pad Cin to the sublane tile (8 f32 / 16 bf16) so every im2col tap group
    # starts on a sublane-tile boundary (aligned stores, no XLU repacking).
    sublane = 8 * (4 // isz) if isz in (1, 2, 4) else 8
    Cin_p = ((Cin + sublane - 1) // sublane) * sublane

    # Row tiling: target >= 2048 lanes per dot, cap im2col scratch at ~12 MiB.
    lane_cap = max(128, (12 << 20) // max(1, 9 * Cin_p * isz))
    TH = _choose_row_tile(H, W, lane_cap=lane_cap)
    R = H // TH
    Lo = TH * W
    Lw = (TH + 2) * W
    Lp = (H + 2) * W

    # Fold the activation scale into the weights ((x*s) conv w == x conv (s*w)),
    # order K as (kh, kw, ci), zero-pad ci to Cin_p to match the im2col rows.
    w = jnp.transpose(weight_oihw.astype(jnp.float32) * scale, (0, 2, 3, 1))
    w = jnp.pad(w, ((0, 0), (0, 0), (0, 0), (0, Cin_p - Cin)))
    w_mat = w.reshape(Cout, 9 * Cin_p).astype(compute_dtype)
    b_col = bias.astype(jnp.float32).reshape(Cout, 1)

    # x: compute dtype, zero-pad channels to Cin_p and H by one halo row each
    # side, then flatten spatial onto the lane axis (contiguous trailing merge).
    x = jnp.pad(x_nchw.astype(compute_dtype),
                ((0, 0), (0, Cin_p - Cin), (1, 1), (0, 0)))
    x_flat = x.reshape(N, Cin_p, Lp)

    # Horizontal-halo source masks for one window, precomputed host-side.
    col = np.arange(Lw) % W
    masks = jnp.asarray(np.stack([(col != W - 1), (col != 0)]).astype(np.float32),
                        dtype=compute_dtype)                          # (2, Lw)

    kern = functools.partial(_conv3x3_kernel, TH=TH, W=W, Cin_p=Cin_p)

    # VMEM budget: double-buffered x / out blocks + im2col scratch + window
    # temporaries + weights + f32 accumulator (+ headroom), clamped to the
    # device capacity (64 MiB on v7x, 128 MiB on v5e/v6e).
    need = (2 * (Cin_p * Lp * isz + Cout * Lo * jnp.dtype(out_dtype).itemsize)
            + 9 * Cin_p * Lo * isz          # im2col scratch
            + 3 * Cin_p * Lw * isz          # win / win_l / win_r temporaries
            + Cout * 9 * Cin_p * isz        # weights
            + Cout * Lo * 4                 # f32 accumulator
            + 2 * Lw * isz)                 # masks
    need = int(need * 1.25) + (2 << 20)
    try:
        cap = int(pltpu.get_tpu_info().vmem_capacity_bytes)
    except Exception:
        cap = 64 << 20                      # conservative fallback (v7x)
    vmem_limit = int(min(0.9 * cap, max(need, 48 << 20)))

    out_flat = pl.pallas_call(
        kern,
        out_shape=jax.ShapeDtypeStruct((N, Cout, H * W), out_dtype),
        grid=(N, R),
        in_specs=[
            # Whole padded image; index map ignores r so it is only re-DMA'd
            # when the batch index changes (reused across all row tiles).
            pl.BlockSpec((1, Cin_p, Lp), lambda n, r: (n, 0, 0)),
            pl.BlockSpec((Cout, 9 * Cin_p), lambda n, r: (0, 0)),
            pl.BlockSpec((Cout, 1), lambda n, r: (0, 0)),
            pl.BlockSpec((2, Lw), lambda n, r: (0, 0)),
        ],
        out_specs=pl.BlockSpec((1, Cout, Lo), lambda n, r: (n, 0, r)),
        scratch_shapes=[pltpu.VMEM((9 * Cin_p, Lo), compute_dtype)],
        compiler_params=pltpu.CompilerParams(
            dimension_semantics=("parallel", "parallel"),
            vmem_limit_bytes=vmem_limit,
        ),
    )(x_flat, w_mat, b_col, masks)

    return out_flat.reshape(N, Cout, H, W)


if __name__ == "__main__":
    N, Cin, Cout, H, W = 2, 4, 8, 16, 16
    scale = (2.0 / (Cin * 1 ** 2)) ** 0.5

    key = jax.random.PRNGKey(0)
    kx, kw_ = jax.random.split(key)
    x = jax.random.normal(kx, (N, Cin, H, W), dtype=jnp.float32)
    weight = jax.random.normal(kw_, (Cout, Cin, 3, 3), dtype=jnp.float32)  # nn.init.normal_
    bias = jnp.zeros((Cout,), dtype=jnp.float32)                           # nn.init.zeros_

    out = jax.block_until_ready(weighted_conv(x, weight, bias, scale))

    dn = ("NCHW", "OIHW", "NCHW")
    # (a) bf16-consistent reference: identical rounding of the scale-folded
    #     weights / activations, f32 accumulation -> tight tolerance.
    w_eff = (weight * scale).astype(jnp.bfloat16).astype(jnp.float32)
    x_bf = x.astype(jnp.bfloat16).astype(jnp.float32)
    ref_bf = jax.lax.conv_general_dilated(
        x_bf, w_eff, (1, 1), "SAME", dimension_numbers=dn,
        precision=jax.lax.Precision.HIGHEST) + bias.reshape(1, Cout, 1, 1)
    np.testing.assert_allclose(np.asarray(out), np.asarray(ref_bf),
                               rtol=1e-2, atol=1e-2)

    # (b) module-exact f32 reference: semantics check within bf16 rounding.
    ref_f32 = jax.lax.conv_general_dilated(
        x * scale, weight, (1, 1), "SAME", dimension_numbers=dn,
        precision=jax.lax.Precision.HIGHEST) + bias.reshape(1, Cout, 1, 1)
    np.testing.assert_allclose(np.asarray(out), np.asarray(ref_f32),
                               rtol=5e-2, atol=2e-1)

    print("KERNEL_OK")
</pallas_src>

<mosaic_0001>
module attributes {stable_mosaic.version = 11 : i64} {
  func.func @_conv3x3_kernel(%arg0: i32, %arg1: i32, %arg2: memref<1x16x288xbf16, #tpu.memory_space<vmem>>, %arg3: memref<8x144xbf16, #tpu.memory_space<vmem>>, %arg4: memref<8x1xf32, #tpu.memory_space<vmem>>, %arg5: memref<2x160xbf16, #tpu.memory_space<vmem>>, %arg6: memref<1x8x128xf32, #tpu.memory_space<vmem>>, %arg7: memref<144x128xbf16, #tpu.memory_space<vmem>>) attributes {dimension_semantics = [#tpu.dimension_semantics<parallel>, #tpu.dimension_semantics<parallel>], iteration_bounds = array<i64: 2, 2>, scalar_prefetch = 0 : i64, scratch_operands = 1 : i64, tpu.core_type = #tpu.core_type<tc>, window_params = [{transform_indices = @transform_0, window_bounds = array<i64: 1, 16, 288>}, {pipeline_mode = #tpu.pipeline_mode<synchronous>, transform_indices = @transform_1, window_bounds = array<i64: 8, 144>}, {pipeline_mode = #tpu.pipeline_mode<synchronous>, transform_indices = @transform_2, window_bounds = array<i64: 8, 1>}, {pipeline_mode = #tpu.pipeline_mode<synchronous>, transform_indices = @transform_3, window_bounds = array<i64: 2, 160>}, {transform_indices = @transform_4, window_bounds = array<i64: 1, 8, 128>}]} {
    %c128_i32 = arith.constant 128 : i32
    %0 = arith.muli %arg1, %c128_i32 : i32
    %1 = tpu.assume_multiple %0, 128 : i32
    %c0 = arith.constant 0 : index
    %c0_0 = arith.constant 0 : index
    %2 = arith.index_cast %1 : i32 to index
    %3 = vector.load %arg2[%c0, %c0_0, %2] : memref<1x16x288xbf16, #tpu.memory_space<vmem>>, vector<1x16x160xbf16>
    %4 = vector.shape_cast %3 : vector<1x16x160xbf16> to vector<16x160xbf16>
    %c0_1 = arith.constant 0 : index
    %c0_2 = arith.constant 0 : index
    %5 = vector.load %arg5[%c0_1, %c0_2] : memref<2x160xbf16, #tpu.memory_space<vmem>>, vector<1x160xbf16>
    %6 = vector.broadcast %5 : vector<1x160xbf16> to vector<16x160xbf16>
    %7 = arith.mulf %4, %6 : vector<16x160xbf16>
    %c1 = arith.constant 1 : index
    %c0_3 = arith.constant 0 : index
    %8 = vector.load %arg5[%c1, %c0_3] : memref<2x160xbf16, #tpu.memory_space<vmem>>, vector<1x160xbf16>
    %9 = vector.broadcast %8 : vector<1x160xbf16> to vector<16x160xbf16>
    %10 = arith.mulf %4, %9 : vector<16x160xbf16>
    %cst = arith.constant 0.000000e+00 : bf16
    %11 = vector.broadcast %cst : bf16 to vector<16x1xbf16>
    %12 = vector.extract_strided_slice %4 {offsets = [0, 0], sizes = [16, 128], strides = [1, 1]} : vector<16x160xbf16> to vector<16x128xbf16>
    %c16 = arith.constant 16 : index
    %c0_4 = arith.constant 0 : index
    %13 = vector.load %arg7[%c16, %c0_4] : memref<144x128xbf16, #tpu.memory_space<vmem>>, vector<16x128xbf16>
    tpu.vector_store %arg7[%c16, %c0_4], %12 {strides = array<i32>} : memref<144x128xbf16, #tpu.memory_space<vmem>>, vector<16x128xbf16>,
    %14 = vector.extract_strided_slice %4 {offsets = [0, 16], sizes = [16, 128], strides = [1, 1]} : vector<16x160xbf16> to vector<16x128xbf16>
    %c64 = arith.constant 64 : index
    %c0_5 = arith.constant 0 : index
    %15 = vector.load %arg7[%c64, %c0_5] : memref<144x128xbf16, #tpu.memory_space<vmem>>, vector<16x128xbf16>
    tpu.vector_store %arg7[%c64, %c0_5], %14 {strides = array<i32>} : memref<144x128xbf16, #tpu.memory_space<vmem>>, vector<16x128xbf16>,
    %16 = vector.extract_strided_slice %4 {offsets = [0, 32], sizes = [16, 128], strides = [1, 1]} : vector<16x160xbf16> to vector<16x128xbf16>
    %c112 = arith.constant 112 : index
    %c0_6 = arith.constant 0 : index
    %17 = vector.load %arg7[%c112, %c0_6] : memref<144x128xbf16, #tpu.memory_space<vmem>>, vector<16x128xbf16>
    tpu.vector_store %arg7[%c112, %c0_6], %16 {strides = array<i32>} : memref<144x128xbf16, #tpu.memory_space<vmem>>, vector<16x128xbf16>,
    %c0_7 = arith.constant 0 : index
    %c0_8 = arith.constant 0 : index
    %18 = vector.load %arg7[%c0_7, %c0_8] : memref<144x128xbf16, #tpu.memory_space<vmem>>, vector<16x1xbf16>
    tpu.vector_store %arg7[%c0_7, %c0_8], %11 {strides = array<i32>} : memref<144x128xbf16, #tpu.memory_space<vmem>>, vector<16x1xbf16>,
    %19 = vector.extract_strided_slice %7 {offsets = [0, 0], sizes = [16, 127], strides = [1, 1]} : vector<16x160xbf16> to vector<16x127xbf16>
    %c0_9 = arith.constant 0 : index
    %c1_10 = arith.constant 1 : index
    %20 = vector.load %arg7[%c0_9, %c1_10] : memref<144x128xbf16, #tpu.memory_space<vmem>>, vector<16x127xbf16>
    tpu.vector_store %arg7[%c0_9, %c1_10], %19 {strides = array<i32>} : memref<144x128xbf16, #tpu.memory_space<vmem>>, vector<16x127xbf16>,
    %21 = vector.extract_strided_slice %7 {offsets = [0, 15], sizes = [16, 128], strides = [1, 1]} : vector<16x160xbf16> to vector<16x128xbf16>
    %c48 = arith.constant 48 : index
    %c0_11 = arith.constant 0 : index
    %22 = vector.load %arg7[%c48, %c0_11] : memref<144x128xbf16, #tpu.memory_space<vmem>>, vector<16x128xbf16>
    tpu.vector_store %arg7[%c48, %c0_11], %21 {strides = array<i32>} : memref<144x128xbf16, #tpu.memory_space<vmem>>, vector<16x128xbf16>,
    %23 = vector.extract_strided_slice %7 {offsets = [0, 31], sizes = [16, 128], strides = [1, 1]} : vector<16x160xbf16> to vector<16x128xbf16>
    %c96 = arith.constant 96 : index
    %c0_12 = arith.constant 0 : index
    %24 = vector.load %arg7[%c96, %c0_12] : memref<144x128xbf16, #tpu.memory_space<vmem>>, vector<16x128xbf16>
    tpu.vector_store %arg7[%c96, %c0_12], %23 {strides = array<i32>} : memref<144x128xbf16, #tpu.memory_space<vmem>>, vector<16x128xbf16>,
    %25 = vector.extract_strided_slice %10 {offsets = [0, 1], sizes = [16, 128], strides = [1, 1]} : vector<16x160xbf16> to vector<16x128xbf16>
    %c32 = arith.constant 32 : index
    %c0_13 = arith.constant 0 : index
    %26 = vector.load %arg7[%c32, %c0_13] : memref<144x128xbf16, #tpu.memory_space<vmem>>, vector<16x128xbf16>
    tpu.vector_store %arg7[%c32, %c0_13], %25 {strides = array<i32>} : memref<144x128xbf16, #tpu.memory_space<vmem>>, vector<16x128xbf16>,
    %27 = vector.extract_strided_slice %10 {offsets = [0, 17], sizes = [16, 128], strides = [1, 1]} : vector<16x160xbf16> to vector<16x128xbf16>
    %c80 = arith.constant 80 : index
    %c0_14 = arith.constant 0 : index
    %28 = vector.load %arg7[%c80, %c0_14] : memref<144x128xbf16, #tpu.memory_space<vmem>>, vector<16x128xbf16>
    tpu.vector_store %arg7[%c80, %c0_14], %27 {strides = array<i32>} : memref<144x128xbf16, #tpu.memory_space<vmem>>, vector<16x128xbf16>,
    %29 = vector.extract_strided_slice %10 {offsets = [0, 33], sizes = [16, 127], strides = [1, 1]} : vector<16x160xbf16> to vector<16x127xbf16>
    %c128 = arith.constant 128 : index
    %c0_15 = arith.constant 0 : index
    %30 = vector.load %arg7[%c128, %c0_15] : memref<144x128xbf16, #tpu.memory_space<vmem>>, vector<16x127xbf16>
    tpu.vector_store %arg7[%c128, %c0_15], %29 {strides = array<i32>} : memref<144x128xbf16, #tpu.memory_space<vmem>>, vector<16x127xbf16>,
    %c128_16 = arith.constant 128 : index
    %c127 = arith.constant 127 : index
    %31 = vector.load %arg7[%c128_16, %c127] : memref<144x128xbf16, #tpu.memory_space<vmem>>, vector<16x1xbf16>
    tpu.vector_store %arg7[%c128_16, %c127], %11 {strides = array<i32>} : memref<144x128xbf16, #tpu.memory_space<vmem>>, vector<16x1xbf16>,
    %c0_17 = arith.constant 0 : index
    %c0_18 = arith.constant 0 : index
    %32 = vector.load %arg3[%c0_17, %c0_18] : memref<8x144xbf16, #tpu.memory_space<vmem>>, vector<8x144xbf16>
    %c0_19 = arith.constant 0 : index
    %c0_20 = arith.constant 0 : index
    %33 = vector.load %arg7[%c0_19, %c0_20] : memref<144x128xbf16, #tpu.memory_space<vmem>>, vector<144x128xbf16>
    %cst_21 = arith.constant dense<0.000000e+00> : vector<8x128xf32>
    %34 = tpu.matmul %32, %33, %cst_21 {dimension_numbers = #tpu.dot_dimension_numbers<[1], [0], [0], [1], [0, 0, 1, 1], [], []>} : vector<8x144xbf16>, vector<144x128xbf16>, vector<8x128xf32> -> vector<8x128xf32>
    %c0_22 = arith.constant 0 : index
    %c0_23 = arith.constant 0 : index
    %35 = vector.load %arg4[%c0_22, %c0_23] : memref<8x1xf32, #tpu.memory_space<vmem>>, vector<8x1xf32>
    %36 = vector.broadcast %35 : vector<8x1xf32> to vector<8x128xf32>
    %37 = arith.addf %34, %36 : vector<8x128xf32>
    %c0_24 = arith.constant 0 : index
    %c0_25 = arith.constant 0 : index
    %c0_26 = arith.constant 0 : index
    %38 = vector.load %arg6[%c0_24, %c0_25, %c0_26] : memref<1x8x128xf32, #tpu.memory_space<vmem>>, vector<1x8x128xf32>
    %39 = vector.shape_cast %38 : vector<1x8x128xf32> to vector<8x128xf32>
    %40 = vector.shape_cast %37 : vector<8x128xf32> to vector<1x8x128xf32>
    tpu.vector_store %arg6[%c0_24, %c0_25, %c0_26], %40 {strides = array<i32>} : memref<1x8x128xf32, #tpu.memory_space<vmem>>, vector<1x8x128xf32>,
    return
  }
  func.func @transform_0(%arg0: i32, %arg1: i32) -> (i32, i32, i32) {
    %c0_i32 = arith.constant 0 : i32
    %c0_i32_0 = arith.constant 0 : i32
    %c0_i32_1 = arith.constant 0 : i32
    return %arg0, %c0_i32, %c0_i32_0 : i32, i32, i32
  }
  func.func @transform_1(%arg0: i32, %arg1: i32) -> (i32, i32) {
    %c0_i32 = arith.constant 0 : i32
    %c0_i32_0 = arith.constant 0 : i32
    %c0_i32_1 = arith.constant 0 : i32
    return %c0_i32, %c0_i32_0 : i32, i32
  }
  func.func @transform_2(%arg0: i32, %arg1: i32) -> (i32, i32) {
    %c0_i32 = arith.constant 0 : i32
    %c0_i32_0 = arith.constant 0 : i32
    %c0_i32_1 = arith.constant 0 : i32
    return %c0_i32, %c0_i32_0 : i32, i32
  }
  func.func @transform_3(%arg0: i32, %arg1: i32) -> (i32, i32) {
    %c0_i32 = arith.constant 0 : i32
    %c0_i32_0 = arith.constant 0 : i32
    %c0_i32_1 = arith.constant 0 : i32
    return %c0_i32, %c0_i32_0 : i32, i32
  }
  func.func @transform_4(%arg0: i32, %arg1: i32) -> (i32, i32, i32) {
    %c0_i32 = arith.constant 0 : i32
    %c0_i32_0 = arith.constant 0 : i32
    return %arg0, %c0_i32, %arg1 : i32, i32, i32
  }
}

</mosaic_0001>

<bundles_post_ra>
// kernel: tpu_custom_call.1
= control target key start
LH: loop header
LB: loop body
LE: loop exit
PB: predicated region body
PF: predicated region fallthrough
CT: control target
= control target key end

     0   :  { %9 = vsyncpa [#allocation4], 0  ;;  %s1157_s0 = inlined_call_operand.hbm [shape: bf16[2,16,288], index: 0, kind: input, shape index: {}]   ;;  %s1158_s1 = inlined_call_operand.vmem [shape: bf16[8,144], index: 1, kind: input, shape index: {}]   ;;  %s1159_s2 = inlined_call_operand.vmem [shape: f32[8,1], index: 2, kind: input, shape index: {}]   ;;  %s1160_s3 = inlined_call_operand.vmem [shape: bf16[2,160], index: 3, kind: input, shape index: {}]   ;;  %s1161_s4 = inlined_call_operand.hbm [shape: f32[2,8,256], index: 4, kind: output, shape index: {}]  }
   0x1   :  { %11 = vsyncpa [#allocation4 + $0x1], 0 }
   0x2   :  { %12 = vsyncpa [#allocation5], 0 }
   0x3   :  { %14 = vsyncpa [#allocation5 + $0x1], 0  ;;  %s908_s15 = smov 0   ;;  %s910_s16 = smov 0  }
   0x4   :  { %s912_s17 = smov 0   ;;  %s914_s18 = smov 0  }
   0x5   :  { %s916_s19 = smov 0   ;;  %s918_s20 = smov 0  }
   0x6   :  { %s920_s21 = smov 0   ;;  %s922_s22 = smov 0  }
   0x7   :  { %s924_s23 = smov 0   ;;  %s926_s24 = smov 0  }
   0x8   :  { %s928_s25 = smov 0  }
   0x9 LB: > { %1166 = sst [smem:[#allocation9_spill]] %s863_s24  ;;  %s566_s26 = sadd.s32 4294967295, %s867_s25   ;;  %s867_s25 = sphi %s928_s25, %s20_s25   ;;  %s863_s24 = sphi %s926_s24, %s1179_s24   ;;  %s859_s23 = sphi %s924_s23, %s1187_s23   ;;  %s855_s22 = sphi %s922_s22, %s1177_s22   ;;  %s851_s21 = sphi %s920_s21, %s1186_s21   ;;  %s847_s20 = sphi %s918_s20, %s1185_s20   ;;  %s843_s19 = sphi %s916_s19, %s1184_s19   ;;  %s839_s18 = sphi %s914_s18, %s1183_s18   ;;  %s835_s17 = sphi %s912_s17, %s1182_s17   ;;  %s831_s16 = sphi %s910_s16, %s1181_s16   ;;  %s827_s15 = sphi %s908_s15, %s1180_s15  }
   0xa   : > { %s567_s27 = sadd.s32 4294967294, %s867_s25   ;;  %s29_s28 = sadd.s32 1, %s859_s23 }
   0xb   : > { %s32_s29 = sadd.s32 1, %s863_s24  ;;  %p30_p0 = scmp.ge.s32.totalorder %s29_s28, 2 }
   0xc   : > { %s39_s30 = sadd.s32 1, %s847_s20  ;;  %p46_p1 = scmp.ne.s32.totalorder %s847_s20, %s843_s19 }
   0xd   : > { %p47_p2 = scmp.eq.s32.totalorder %s867_s25, 0  ;;  %s1189_s28 = smov (%p30_p0, %s29_s28), 0 }
   0xe   : > { %1167 = sst [smem:[#allocation10_spill]] %s1189_s28  ;;  %s1191_s29 = smov (!%p30_p0, %s32_s29), %s863_s24 }
   0xf   : > { %p972_p3 = por %p47_p2, %p46_p1  ;;  %p52_p4 = scmp.ne.s32.totalorder %s843_s19, %s839_s18 }
  0x10   : > { %p34_p5 = scmp.ge.s32.totalorder %s1191_s29, 2  ;;  %p53_p6 = scmp.eq.s32.totalorder %s566_s26, 0 }
  0x11   : > { %s126_s6 = ssub.s32 %s859_s23, %s1189_s28  ;;  %s130_s7 = sadd.s32 1, %s835_s17 }
  0x12   : > { %s1193_s29 = smov (%p34_p5, %s1191_s29), 0  ;;  %p982_p7 = por %p53_p6, %p52_p4 }
  0x13   : > { %1169 = sst [smem:[#allocation11_spill]] %s1193_s29  ;;  %p140_p8 = scmp.ne.s32.totalorder %s835_s17, %s831_s16 }
  0x14   : > { %s36_s9 = ssub.s32 %s863_s24, %s1193_s29  ;;  %p141_p9 = scmp.eq.s32.totalorder %s566_s26, 3 }
  0x15   : > { %p37_p10 = scmp.eq.s32.totalorder %s36_s9, 0  ;;  %s127_s10 = sor.u32 %s126_s6, %s36_s9 }
  0x16   : > { %p128_p11 = scmp.eq.s32.totalorder %s127_s10, 0  ;;  %p990_p12 = por %p141_p9, %p140_p8 }
  0x17   : > { %s995_s12 = scalar_select %p37_p10, %s847_s20, %s39_s30  }
  0x18   : > { %s1171_s11 = scalar_select %p990_p12, 1, 0 }
  0x19   : > { %s998_s13 = scalar_select %p128_p11, %s835_s17, %s130_s7  }
  0x1a   : > { %p146_p13 = scmp.ne.s32.totalorder %s831_s16, %s827_s15  ;;  %p147_p0 = scmp.eq.s32.totalorder %s567_s27, 3 }
  0x1b   : > { %p607_p1 = scmp.lt.s32.totalorder %s867_s25, 4  ;;  %s176_s18 = sand.u32 1, %s847_s20  }
  0x1c   : > { %p1003_p2 = por %p147_p0, %p146_p13  ;;  %s592_s26 = smul.u32 24, %s176_s18 }
  0x1d   : > { %s593_s6 = smul.u32 384, %s863_s24  ;;  %p1011_p4 = pnand %p607_p1, %p972_p3 }
  0x1e   : > { %s1172_s14 = scalar_select %p1003_p2, 1, 0 }
  0x1f   : > { %s1018_s7 = scalar_lea.hbm %s1157_s0, %s593_s6  ;;  %s180_s27 = scalar_lea.vmem [#allocation3], %s592_s26 }
  0x20   : > { %s187_s29 = sshll.u32 %s180_s27, 4  ;;  %s1023_s5 = scalar_lea.sflag [#allocation4], %s176_s18  ;;  %s1020_s29 = int_to_ptr.vmem [resolvable:$true] %s187_s29 }
  0x21   : > { %s715_s28 = scalar_lea.hbm %s1018_s7, 384  ;;  %p717_p6 = pneg %p1011_p4 }
  0x22   : > { %p716_p3 = scmp.ne.s32.totalorder %s1018_s7, %s715_s28  ;;  %s720_s30 = scalar_lea.hbm %s1157_s0, 768 }
  0x23   : > { %p721_p10 = scmp.lt.u32.totalorder %s1018_s7, %s1157_s0  ;;  %p722_p11 = scmp.lt.u32.totalorder %s720_s30, %s715_s28 }
  0x24   : > { %p718_p8 = pnand %p717_p6, %p716_p3  ;;  %p724_p0 = scmp.lt.u32.totalorder %s715_s28, %s1018_s7 }
  0x25   : > { %p723_p13 = por %p722_p11, %p721_p10 }
  0x26   : > { %p719_p9 = pneg %p718_p8 }
  0x27   : > { %p725_p1 = por %p724_p0, %p723_p13 }
  0x29   : > { %p726_p5 = pnand %p725_p1, %p719_p9 }
  0x2b   : > { %729 = shalt.err (!%p726_p5)
}
  0x2c   : > { %s730_s18 = scalar_lea.vmem %s1020_s29, 384  ;;  %s869_s27 = smov [#allocation3]  }
  0x2d   : > { %p731_p3 = scmp.ne.s32.totalorder %s1020_s29, %s730_s18  ;;  %s735_s6 = sshll.u32 %s869_s27, 4  ;;  %s736_s6 = int_to_ptr.vmem [resolvable:$false] %s735_s6 }
  0x2e   : > { %s737_s24 = scalar_lea.vmem %s736_s6, 768  ;;  %p738_p12 = scmp.lt.s32.totalorder %s1020_s29, %s736_s6 }
  0x2f   : > { %p733_p8 = pnand %p731_p3, %p717_p6  ;;  %p739_p10 = scmp.lt.s32.totalorder %s737_s24, %s730_s18 }
  0x31   : > { %p734_p2 = pneg %p733_p8  ;;  %p740_p11 = por %p739_p10, %p738_p12 }
  0x33   : > { %p741_p13 = pnand %p740_p11, %p734_p2 }
  0x35   : > { %744 = shalt.err (!%p741_p13)
}
  0x36   : > { %s870_s28 = smov 192   ;;  %s871_s10 = smov 12  }
  0x37   : > { %602 = dma.hbm_to_vmem [thread:$0]  (!%p1011_p4), %s1018_s7, 384, %s1020_s29, %s1023_s5, %s870_s28, %s870_s28, %s871_s10  }
  0x38   : > { %p195_p5 = scmp.lt.s32.totalorder %s867_s25, 5  ;;  %p1174_p6 = scmp.ge.s32.totalorder %s867_s25, 1 }
  0x3a   : > { %p196_p9 = pnand %p1174_p6, %p195_p5 }
  0x3b   : > { %s201_s30 = sand.u32 (!%p196_p9), 1, %s843_s19  }
  0x3c   : > { %199 = sbr.rel (%p196_p9) target bundleno = 473 (0x1d9), region = 36  ;;  %s202_s18 = scalar_lea.sflag (!%p196_p9), [#allocation4], %s201_s30 }
  0x3d   : > { %s594_s26 = smul.u32 (!%p196_p9), 24, %s201_s30 }
  0x3f   : > { %s205_s27 = scalar_lea.vmem (!%p196_p9), [#allocation3], %s594_s26 }
  0x43   : > { %818 = dma.done.wait (%p982_p7), %s202_s18, 384  }
  0x44   : > { %820 = vsyncadd (%p982_p7), %s202_s18, 4294966912  ;;  %s573_s6 = sshll.u32 %s851_s21, 7  ;;  %v251_v0 = vlaneseq  ;;  %vm332_vm0 = vcmask 7168   ;;  %v872_v1 = vmov 1966171168   ;;  %v873_v4 = vmov 0  }
  0x45   : > { %s232_s29 = sshra.s32 %s573_s6, 7  ;;  %v249_v2 = vunpack.c.l.s4 %v872_v1  ;;  %333 = vst.msk [vmem:[#allocation2] sm:$0xff] %vm332_vm0, %v873_v4  ;;  %424 = vmatprep.subr.bf16.mxu0 %v873_v4  ;;  %709 = vset.pattern.permute.xlu1 %v873_v4  ;;  %v575_v9 = vld.sshfl [vmem:[%s1160_s3] sm:$0x11 pattern:$0x75316420] }
  0x46   : > { %s574_s9 = sshll.u32 %s232_s29, 2  ;;  %v252_v3 = vshrl.u32 %v251_v0, 7  ;;  %710 = vset.pattern.permute.xlu0 %v873_v4  ;;  %v247_v10 = vcombine.high %v575_v9, %v575_v9  ;;  %s874_s24 = smov 1   ;;  %v398_v36 = vld [vmem:[%s1158_s1] sm:$0xff]  ;;  %vm420_vm1 = vcmask 130048   ;;  %vm342_vm2 = vcmask 1047560  }
  0x47   : > { %v250_v5 = vunpack.c.0.s8 %v249_v2  ;;  %s235_s8 = scalar_lea.vmem %s205_s27, %s574_s9 [#allocation3]  ;;  %s875_s28 = smov 127   ;;  %v585_v37 = vcombine.high %v398_v36, %v398_v36  ;;  %v408_v38 = vld [vmem:[%s1159_s2] sm:$0xff]  ;;  %vm375_vm3 = vcmask 1039360   ;;  %vm351_vm4 = vcmask 924672  }
  0x48   : > { %v236_v7 = vld [vmem:[%s235_s8] sm:$0xff]  ;;  %v237_v8 = vld [vmem:[%s235_s8 + $0xc] sm:$0xff]  ;;  %v267_v12 = vsub.s32 0, %v252_v3  ;;  %s876_s10 = smov 113   ;;  %s877_s30 = smov 112   ;;  %vm320_vm5 = vcmask 916480   ;;  %v584_v63 = vcombine.low %v398_v36, %v398_v36 }
  0x49   : > { %v253_v6 = vsub.s32 %v250_v5, %v252_v3  ;;  %v1067_v13 = vcombine.low %v236_v7, %v237_v8  ;;  %v579_v35 = vcombine.high %v236_v7, %v237_v8  ;;  %s878_s26 = smov 111   ;;  %s879_s18 = smov 97   ;;  %586 = vmatprep.mubr.msk.bf16.mxu0 %vm420_vm1, %v585_v37  ;;  %vm383_vm6 = vcmask 908288  }
  0x4a   : > { %s880_s27 = smov 96   ;;  %s881_s6 = smov 95   ;;  %vm359_vm7 = vcmask 793600   ;;  %vm328_vm8 = vcmask 785408   ;;  %vm391_vm9 = vcmask 777216   ;;  %vm396_vm10 = vcmask 1048568  }
  0x4b   : > { %v254_v11 = vrot.slane %v575_v9, %v253_v6  ;;  %v261_v14 = vrot.slane %v247_v10, %v253_v6  ;;  %s227_s5 = sand.u32 1, %s831_s16   ;;  %p1175_p12 = scmp.ne.s32.totalorder %s1171_s11, 0 }
  0x4c   : > { %s882_s9 = smov [#allocation6]  }
  0x4d   : > { %v263_v15 = vpack.i.b16 %v254_v11, %v254_v11  ;;  %v284_v16 = vshrl.u32 %v254_v11, 16  ;;  %v270_v18 = vpack.i.b16 %v261_v14, %v261_v14  ;;  %v291_v20 = vshrl.u32 %v261_v14, 16  ;;  %s749_s8 = sshll.u32 %s882_s9, 4  ;;  %s750_s8 = int_to_ptr.vmem [resolvable:$false] %s749_s8 }
  0x4e   : > { %s751_s7 = scalar_lea.vmem %s750_s8, 256 }
  0x4f   : > { %v268_v17 = vrot.slane %v263_v15, %v267_v12  ;;  %v285_v19 = vpack.i.b16 %v284_v16, %v284_v16  ;;  %v275_v21 = vrot.slane %v270_v18, %v267_v12  ;;  %v292_v23 = vpack.i.b16 %v291_v20, %v291_v20 }
  0x51   : > { %v290_v22 = vrot.slane %v285_v19, %v267_v12  ;;  %v576_v24 = vcombine.low %v268_v17, %v275_v21  ;;  %v297_v25 = vrot.slane %v292_v23, %v267_v12 }
  0x53   : > { %v282_v26 = vmul.bf16 %v576_v24, %v236_v7  ;;  %v283_v27 = vmul.bf16 %v576_v24, %v237_v8  ;;  %v577_v28 = vcombine.low %v290_v22, %v297_v25 }
  0x55   : > { %v580_v29 = vcombine.low %v282_v26, %v283_v27  ;;  %v304_v30 = vmul.bf16 %v577_v28, %v236_v7  ;;  %v305_v31 = vmul.bf16 %v577_v28, %v237_v8  ;;  %v581_v34 = vcombine.high %v282_v26, %v283_v27 }
  0x57   : > { %339 = vrot.lane.b32.xlu0 %v580_v29, %s874_s24  ;;  %v583_v32 = vcombine.high %v304_v30, %v305_v31  ;;  %v582_v33 = vcombine.low %v304_v30, %v305_v31  ;;  %s572_s24 = sshll.u32 %s227_s5, 3 }
  0x59   : > { %373 = vrot.lane.b32.xlu1 %v583_v32, %s875_s28 }
  0x5b   : > { %371 = vrot.lane.b32.xlu0 %v582_v33, %s875_s28  ;;  %s588_s28 = sshll.u32 %s855_s22, 1 }
  0x5d   : > { %347 = vrot.lane.b32.xlu1 %v580_v29, %s876_s10 }
  0x5f   : > { %349 = vrot.lane.b32.xlu0 %v581_v34, %s876_s10  ;;  %s477_s10 = sadd.s32 %s851_s21, %s588_s28  ;;  %s466_s21 = scalar_lea.sflag [#allocation5], %s227_s5 }
  0x61   : > { %316 = vrot.lane.b32.xlu1 %v1067_v13, %s877_s30 }
  0x63   : > { %318 = vrot.lane.b32.xlu0 %v579_v35, %s877_s30  ;;  %s589_s30 = sshll.u32 %s477_s10, 7 }
  0x64   : > { %s1095_s29 = scalar_lea.hbm %s1161_s4, %s589_s30 }
  0x65   : > { %379 = vrot.lane.b32.xlu1 %v582_v33, %s878_s26 }
  0x67   : > { %381 = vrot.lane.b32.xlu0 %v583_v32, %s878_s26  ;;  %s229_s26 = scalar_lea.vmem [#allocation6], %s572_s24 }
  0x69   : > { %355 = vrot.lane.b32.xlu1 %v580_v29, %s879_s18 }
  0x6b   : > { %357 = vrot.lane.b32.xlu0 %v581_v34, %s879_s18  ;;  %s481_s18 = sshll.u32 %s229_s26, 4  ;;  %s1097_s18 = int_to_ptr.vmem [resolvable:$true] %s481_s18 }
  0x6c   : > { %s745_s22 = scalar_lea.vmem %s1097_s18, 128  ;;  %p752_p0 = scmp.lt.s32.totalorder %s1097_s18, %s750_s8 }
  0x6d   : > { %324 = vrot.lane.b32.xlu1 %v1067_v13, %s880_s27  ;;  %p746_p7 = scmp.ne.s32.totalorder %s1097_s18, %s745_s22  ;;  %p753_p1 = scmp.lt.s32.totalorder %s751_s7, %s745_s22 }
  0x6f   : > { %326 = vrot.lane.b32.xlu0 %v579_v35, %s880_s27  ;;  %p747_p2 = pnand %p746_p7, %p1175_p12  ;;  %p754_p3 = por %p753_p1, %p752_p0 }
  0x71   : > { %387 = vrot.lane.b32.xlu1 %v582_v33, %s881_s6  ;;  %p748_p4 = pneg %p747_p2 }
  0x73   : > { %389 = vrot.lane.b32.xlu0 %v583_v32, %s881_s6  ;;  %p755_p8 = pnand %p754_p3, %p748_p4 }
  0x75   : > { %411 = vperm.xlu1 %709, %v408_v38  }
  0xc9   : > { %v340_v39 = vpop.permute.xlu0 %339 }
  0xca   : > { %343 = vst.msk [vmem:[#allocation2] sm:$0xff] %vm342_vm2, %v340_v39 }
  0xcb   : > { %v374_v40 = vpop.permute.xlu1 %373 }
  0xcd   : > { %v372_v41 = vpop.permute.xlu0 %371 }
  0xce   : > { %v376_v42 = vsel %vm375_vm3, %v372_v41, %v374_v40 }
  0xcf   : > { %v348_v43 = vpop.permute.xlu1 %347 }
  0xd1   : > { %v399_v44 = vld [vmem:[#allocation2] sm:$0xff]  ;;  %v350_v45 = vpop.permute.xlu0 %349 }
  0xd2   : > { %425 = vmatpush1.bf16.msra.mxu0 %v399_v44  ;;  %v352_v46 = vsel %vm351_vm4, %v348_v43, %v350_v45 }
  0xd3   : > { %426 = vmatprep.subr.bf16.mxu0 %v873_v4  ;;  %v317_v47 = vpop.permute.xlu1 %316 }
  0xd5   : > { %v319_v48 = vpop.permute.xlu0 %318 }
  0xd6   : > { %427 = vmatpush1.bf16.msra.mxu0 %v1067_v13  ;;  %v321_v49 = vsel %vm320_vm5, %v317_v47, %v319_v48 }
  0xd7   : > { %428 = vmatprep.subr.bf16.mxu0 %v873_v4  ;;  %v380_v50 = vpop.permute.xlu1 %379 }
  0xd9   : > { %v382_v51 = vpop.permute.xlu0 %381 }
  0xda   : > { %429 = vmatpush1.bf16.msra.mxu0 %v376_v42  ;;  %v384_v52 = vsel %vm383_vm6, %v380_v50, %v382_v51 }
  0xdb   : > { %430 = vmatprep.subr.bf16.mxu0 %v873_v4  ;;  %v356_v53 = vpop.permute.xlu1 %355 }
  0xdd   : > { %v358_v54 = vpop.permute.xlu0 %357 }
  0xde   : > { %431 = vmatpush1.bf16.msra.mxu0 %v352_v46  ;;  %v360_v55 = vsel %vm359_vm7, %v356_v53, %v358_v54 }
  0xdf   : > { %432 = vmatprep.subr.bf16.mxu0 %v873_v4  ;;  %v325_v56 = vpop.permute.xlu1 %324 }
  0xe1   : > { %v327_v57 = vpop.permute.xlu0 %326 }
  0xe2   : > { %433 = vmatpush1.bf16.msra.mxu0 %v321_v49  ;;  %v329_v58 = vsel %vm328_vm8, %v325_v56, %v327_v57 }
  0xe3   : > { %434 = vmatprep.subr.bf16.mxu0 %v873_v4  ;;  %v388_v59 = vpop.permute.xlu1 %387 }
  0xe5   : > { %v390_v60 = vpop.permute.xlu0 %389 }
  0xe6   : > { %435 = vmatpush1.bf16.msra.mxu0 %v384_v52  ;;  %v392_v61 = vsel %vm391_vm9, %v388_v59, %v390_v60 }
  0xe7   : > { %395 = vst.msk [vmem:[#allocation2 + $0x40] sm:$0xff] %vm375_vm3, %v392_v61  ;;  %436 = vmatprep.subr.bf16.mxu0 %v873_v4 }
  0xe8   : > { %397 = vst.msk [vmem:[#allocation2 + $0x40] sm:$0xff] %vm396_vm10, %v873_v4 }
  0xea   : > { %437 = vmatpush1.bf16.msra.mxu0 %v360_v55 }
  0xeb   : > { %438 = vmatprep.subr.bf16.mxu0 %v873_v4 }
  0xee   : > { %439 = vmatpush1.bf16.msra.mxu0 %v329_v58 }
  0xef   : > { %440 = vmatprep.subr.bf16.mxu0 %v873_v4  ;;  %v407_v62 = vld [vmem:[#allocation2 + $0x40] sm:$0xff] }
  0xf2   : > { %441 = vmatpush1.bf16.msra.mxu0 %v407_v62 }
  0xf4   : > { %v412_v0 = vpop.permute.xlu1 %411 }
  0xf5   : > { %457 = vmatmul.mubr.bf16.vlgmr.msra.gmra.mrb[0].mxu0 %v584_v63 }
 0x1c8   : > { %v458_v1 = vpop.f32.mrb[0].mxu0 }
 0x1c9   : > { %v459_v2 = vadd.f32 %v458_v1, %v412_v0  ;;  %v460_v3 = vpop.f32.mrb[1].mxu0 }
 0x1ca   : > { %v461_v4 = vpop.f32.mrb[2].mxu0 }
 0x1cb   : > { %464 = vst [vmem:[%s229_s26] sm:$0xff] %v459_v2  ;;  %v462_v5 = vpop.f32.mrb[3].mxu0 }
 0x1cc   : > { %758 = shalt.err (!%p755_p8)
}
 0x1cd   : > { %s759_s5 = scalar_lea.hbm %s1095_s29, 128  ;;  %s763_s10 = scalar_lea.hbm %s1161_s4, 512 }
 0x1ce   : > { %p760_p10 = scmp.ne.s32.totalorder %s1095_s29, %s759_s5  ;;  %p764_p5 = scmp.lt.u32.totalorder %s1095_s29, %s1161_s4 }
 0x1cf   : > { %p765_p6 = scmp.lt.u32.totalorder %s763_s10, %s759_s5  ;;  %p767_p7 = scmp.lt.u32.totalorder %s759_s5, %s1095_s29 }
 0x1d0   : > { %p761_p11 = pnand %p760_p10, %p1175_p12 }
 0x1d1   : > { %p766_p9 = por %p765_p6, %p764_p5 }
 0x1d2   : > { %p762_p13 = pneg %p761_p11 }
 0x1d3   : > { %p768_p2 = por %p767_p7, %p766_p9 }
 0x1d5   : > { %p769_p4 = pnand %p768_p2, %p762_p13 }
 0x1d7   : > { %772 = shalt.err (!%p769_p4)
}
 0x1d8   : > { %597 = dma.vmem_to_hbm [thread:$0]  (%p1175_p12), %s1097_s18, 128, %s1095_s29, %s466_s21  }
 0x1d9 PF: > { %p608_p0 = scmp.ge.s32.totalorder %s867_s25, 2  ;;  %s493_s27 = sand.u32 1, %s827_s15  }
 0x1da   : > { %p1176_p1 = scmp.ne.s32.totalorder %s1172_s14, 0  ;;  %s494_s6 = scalar_lea.sflag [#allocation5], %s493_s27 }
 0x1dc   : > { %p604_p3 = pnand %p608_p0, %p1176_p1 }
 0x1de   : > { %822 = dma.done.wait (!%p604_p3), %s494_s6, 128  }
 0x1df   : > { %824 = vsyncadd (!%p604_p3), %s494_s6, 4294967168  ;;  %s20_s25 = sadd.s32 1, %s867_s25   ;;  %s1177_s22 = sld [smem:[#allocation9_spill]] }
 0x1e0   : > { %p17_p8 = scmp.ge.s32.totalorder %s20_s25, 6   ;;  %s1178_s11 = sld [smem:[#allocation10_spill]] }
 0x1e1   : > { %s1179_s24 = sld [smem:[#allocation11_spill]]  ;;  %s1180_s15 = smov %s831_s16 }
 0x1e2   : > { %s1181_s16 = smov %s835_s17  ;;  %s1182_s17 = smov %s998_s13 }
 0x1e3   : > { %s1183_s18 = smov %s843_s19  ;;  %s1184_s19 = smov %s847_s20 }
 0x1e4   : > { %s1185_s20 = smov %s995_s12  ;;  %s1186_s21 = smov %s859_s23 }
 0x1e5   :  { %19 = sbr.rel (!%p17_p8) target bundleno = 9 (0x9), region = 82 }
 0x1e6   : > { %s1187_s23 = smov %s1178_s11 }
 0x1ec   :  { %499 = vsyncpa [#allocation4], 1 }
 0x1ed   :  { %501 = vsyncpa [#allocation4 + $0x1], 1 }
 0x1ee   :  { %502 = vsyncpa [#allocation5], 1 }
 0x1ef   :  { %504 = vsyncpa [#allocation5 + $0x1], 1 }

</bundles_post_ra>
